<compile_context>
chip_gen: v7x
topology: tpu7x:2x2x1
jax: 0.10.0
libtpu: 0.0.40
codegen_flags: <defaults>
</compile_context>

<pallas_src>
import jax
import jax.numpy as jnp
from jax.experimental import pallas as pl
from jax.experimental.pallas import tpu as pltpu


def _fbl_kernel(labels_ref, cam_ref, pf_ref, fore_rep_ref, back_rep_ref, fmap_ref):
    # Block views:
    #   labels_ref: (TB, C, 1)   cam_ref: (TB, C, N)   pf_ref: (TB, N, D)
    #   fore_rep_ref / back_rep_ref: (TB, D)   fmap_ref: (TB, N)
    TB = pf_ref.shape[0]

    labels = labels_ref[...].astype(jnp.float32)            # (TB, C, 1) 0/1 mask
    cam = cam_ref[...].astype(jnp.float32) * labels          # (TB, C, N) masked CAM

    fore = jnp.max(cam, axis=1)                               # (TB, N) max over classes
    # CAM normalization: shift by per-row min, divide by per-row max clamped to 1e-12.
    fore = fore - jnp.min(fore, axis=-1, keepdims=True)
    denom = jnp.maximum(jnp.max(fore, axis=-1, keepdims=True), 1e-12)
    fore = fore / denom                                       # (TB, N)
    fmap_ref[...] = fore.astype(fmap_ref.dtype)

    # fore_rep[b] = fore[b] @ pf[b]; back_rep[b] = (1 - fore[b]) @ pf[b]
    #             = colsum(pf[b]) - fore_rep[b]   (no second matmul).
    rep_rows = []
    sum_rows = []
    for b in range(TB):  # TB is small & static; unrolled at trace time
        pf_b = pf_ref[b].astype(jnp.float32)                  # (N, D)
        rep_rows.append(
            jnp.dot(fore[b:b + 1, :], pf_b, preferred_element_type=jnp.float32))  # (1, D)
        sum_rows.append(jnp.sum(pf_b, axis=0, keepdims=True))                     # (1, D)

    fore_rep = jnp.concatenate(rep_rows, axis=0) if TB > 1 else rep_rows[0]   # (TB, D)
    pf_sum = jnp.concatenate(sum_rows, axis=0) if TB > 1 else sum_rows[0]     # (TB, D)

    fore_rep_ref[...] = fore_rep.astype(fore_rep_ref.dtype)
    back_rep_ref[...] = (pf_sum - fore_rep).astype(back_rep_ref.dtype)


def fore_back_learning(patch_feats, cam, logits, *, tb=8):
    """Pallas implementation of ForeBackLearning.forward (norm=None, dropout=None)."""
    B, N, D = patch_feats.shape
    _, C, _ = cam.shape

    # Labels precomputed in the wrapper (keeps sigmoid/threshold out of the kernel and
    # avoids DMA-ing raw logits). Trailing singleton keeps the in-kernel mask a cheap
    # lane-broadcast against cam's (C, N) slabs.
    labels = (jax.nn.sigmoid(logits) >= 0.5).astype(cam.dtype)   # (B, C)
    labels3 = labels[:, :, None]                                  # (B, C, 1)

    TB = min(tb, B)
    B_pad = pl.cdiv(B, TB) * TB
    if B_pad != B:
        pad = ((0, B_pad - B), (0, 0), (0, 0))
        patch_feats_p = jnp.pad(patch_feats, pad)
        cam_p = jnp.pad(cam, pad)
        labels3_p = jnp.pad(labels3, pad)
    else:
        patch_feats_p, cam_p, labels3_p = patch_feats, cam, labels3

    grid = (B_pad // TB,)
    out_shapes = (
        jax.ShapeDtypeStruct((B_pad, D), patch_feats.dtype),  # fore_rep
        jax.ShapeDtypeStruct((B_pad, D), patch_feats.dtype),  # back_rep
        jax.ShapeDtypeStruct((B_pad, N), cam.dtype),          # fore_map
    )

    fore_rep, back_rep, fore_map = pl.pallas_call(
        _fbl_kernel,
        out_shape=out_shapes,
        grid=grid,
        in_specs=[
            pl.BlockSpec((TB, C, 1), lambda b: (b, 0, 0)),
            pl.BlockSpec((TB, C, N), lambda b: (b, 0, 0)),
            pl.BlockSpec((TB, N, D), lambda b: (b, 0, 0)),
        ],
        out_specs=(
            pl.BlockSpec((TB, D), lambda b: (b, 0)),
            pl.BlockSpec((TB, D), lambda b: (b, 0)),
            pl.BlockSpec((TB, N), lambda b: (b, 0)),
        ),
        compiler_params=pltpu.CompilerParams(dimension_semantics=("parallel",)),
    )(labels3_p, cam_p, patch_feats_p)

    # Match the module's output shapes: (B,1,D), (B,1,D), (B,N).
    return fore_rep[:B, None, :], back_rep[:B, None, :], fore_map[:B]


if __name__ == "__main__":
    key = jax.random.PRNGKey(0)
    # Small shapes: batch=2, classes=4, patches=16x16=256 (flattened spatial), hidden=32
    B, C, N, D = 2, 4, 256, 32
    k1, k2, k3 = jax.random.split(key, 3)
    patch_feats = jax.random.normal(k1, (B, N, D), dtype=jnp.float32)
    cam = jax.random.uniform(k2, (B, C, N), dtype=jnp.float32)
    logits = jax.random.normal(k3, (B, C), dtype=jnp.float32)

    fore_rep, back_rep, fore_map = jax.block_until_ready(
        fore_back_learning(patch_feats, cam, logits)
    )

    # Pure-JAX reference for correctness.
    lab = (jax.nn.sigmoid(logits) >= 0.5).astype(jnp.float32)
    cam_m = lab[:, :, None] * cam
    fm = jnp.max(cam_m, axis=1, keepdims=True)
    fm = fm - jnp.min(fm, axis=-1, keepdims=True)
    fm = fm / jnp.maximum(jnp.max(fm, axis=-1, keepdims=True), 1e-12)
    bm = 1.0 - fm
    fr = jnp.matmul(fm, patch_feats)
    br = jnp.matmul(bm, patch_feats)

    assert fore_rep.shape == (B, 1, D) and back_rep.shape == (B, 1, D) and fore_map.shape == (B, N)
    assert jnp.allclose(fore_rep, fr, atol=1e-4, rtol=1e-4)
    assert jnp.allclose(back_rep, br, atol=1e-4, rtol=1e-4)
    assert jnp.allclose(fore_map, fm.squeeze(1), atol=1e-5, rtol=1e-5)

    print("KERNEL_OK")
</pallas_src>

<mosaic_0001>
module attributes {stable_mosaic.version = 11 : i64} {
  func.func @_fbl_kernel(%arg0: i32, %arg1: memref<2x4x1xf32, #tpu.memory_space<vmem>>, %arg2: memref<2x4x256xf32, #tpu.memory_space<vmem>>, %arg3: memref<2x256x32xf32, #tpu.memory_space<vmem>>, %arg4: memref<2x32xf32, #tpu.memory_space<vmem>>, %arg5: memref<2x32xf32, #tpu.memory_space<vmem>>, %arg6: memref<2x256xf32, #tpu.memory_space<vmem>>) attributes {dimension_semantics = [#tpu.dimension_semantics<parallel>], iteration_bounds = array<i64: 1>, scalar_prefetch = 0 : i64, scratch_operands = 0 : i64, tpu.core_type = #tpu.core_type<tc>, window_params = [{transform_indices = @transform_0, window_bounds = array<i64: 2, 4, 1>}, {transform_indices = @transform_1, window_bounds = array<i64: 2, 4, 256>}, {transform_indices = @transform_2, window_bounds = array<i64: 2, 256, 32>}, {transform_indices = @transform_3, window_bounds = array<i64: 2, 32>}, {transform_indices = @transform_4, window_bounds = array<i64: 2, 32>}, {transform_indices = @transform_5, window_bounds = array<i64: 2, 256>}]} {
    %c0 = arith.constant 0 : index
    %c0_0 = arith.constant 0 : index
    %c0_1 = arith.constant 0 : index
    %0 = vector.load %arg1[%c0, %c0_0, %c0_1] : memref<2x4x1xf32, #tpu.memory_space<vmem>>, vector<2x4x1xf32>
    %c0_2 = arith.constant 0 : index
    %c0_3 = arith.constant 0 : index
    %c0_4 = arith.constant 0 : index
    %1 = vector.load %arg2[%c0_2, %c0_3, %c0_4] : memref<2x4x256xf32, #tpu.memory_space<vmem>>, vector<2x4x256xf32>
    %2 = vector.broadcast %0 : vector<2x4x1xf32> to vector<2x4x256xf32>
    %3 = arith.mulf %1, %2 : vector<2x4x256xf32>
    %cst = arith.constant dense<0xFF800000> : vector<2x256xf32>
    %4 = vector.multi_reduction <maximumf>, %3, %cst [1] : vector<2x4x256xf32> to vector<2x256xf32>
    %cst_5 = arith.constant dense<0x7F800000> : vector<2xf32>
    %5 = vector.multi_reduction <minimumf>, %4, %cst_5 [1] : vector<2x256xf32> to vector<2xf32>
    %6 = vector.shape_cast %5 : vector<2xf32> to vector<2x1xf32>
    %7 = vector.broadcast %6 : vector<2x1xf32> to vector<2x256xf32>
    %8 = arith.subf %4, %7 : vector<2x256xf32>
    %cst_6 = arith.constant dense<0xFF800000> : vector<2xf32>
    %9 = vector.multi_reduction <maximumf>, %8, %cst_6 [1] : vector<2x256xf32> to vector<2xf32>
    %10 = vector.shape_cast %9 : vector<2xf32> to vector<2x1xf32>
    %cst_7 = arith.constant 9.99999996E-13 : f32
    %11 = vector.broadcast %cst_7 : f32 to vector<2x1xf32>
    %12 = arith.maximumf %10, %11 : vector<2x1xf32>
    %13 = vector.broadcast %12 : vector<2x1xf32> to vector<2x256xf32>
    %14 = arith.divf %8, %13 : vector<2x256xf32>
    %c0_8 = arith.constant 0 : index
    %c0_9 = arith.constant 0 : index
    %15 = vector.load %arg6[%c0_8, %c0_9] : memref<2x256xf32, #tpu.memory_space<vmem>>, vector<2x256xf32>
    tpu.vector_store %arg6[%c0_8, %c0_9], %14 {strides = array<i32>} : memref<2x256xf32, #tpu.memory_space<vmem>>, vector<2x256xf32>,
    %c0_10 = arith.constant 0 : index
    %c0_11 = arith.constant 0 : index
    %c0_12 = arith.constant 0 : index
    %16 = vector.load %arg3[%c0_10, %c0_11, %c0_12] : memref<2x256x32xf32, #tpu.memory_space<vmem>>, vector<1x256x32xf32>
    %17 = vector.shape_cast %16 : vector<1x256x32xf32> to vector<256x32xf32>
    %18 = vector.extract_strided_slice %14 {offsets = [0, 0], sizes = [1, 256], strides = [1, 1]} : vector<2x256xf32> to vector<1x256xf32>
    %cst_13 = arith.constant dense<0.000000e+00> : vector<1x32xf32>
    %19 = tpu.matmul %18, %17, %cst_13 {dimension_numbers = #tpu.dot_dimension_numbers<[1], [0], [0], [1], [0, 0, 1, 1], [], []>} : vector<1x256xf32>, vector<256x32xf32>, vector<1x32xf32> -> vector<1x32xf32>
    %cst_14 = arith.constant dense<0.000000e+00> : vector<32xf32>
    %20 = vector.multi_reduction <add>, %17, %cst_14 [0] : vector<256x32xf32> to vector<32xf32>
    %21 = vector.shape_cast %20 : vector<32xf32> to vector<1x32xf32>
    %c1 = arith.constant 1 : index
    %c0_15 = arith.constant 0 : index
    %c0_16 = arith.constant 0 : index
    %22 = vector.load %arg3[%c1, %c0_15, %c0_16] : memref<2x256x32xf32, #tpu.memory_space<vmem>>, vector<1x256x32xf32>
    %23 = vector.shape_cast %22 : vector<1x256x32xf32> to vector<256x32xf32>
    %24 = vector.extract_strided_slice %14 {offsets = [1, 0], sizes = [1, 256], strides = [1, 1]} : vector<2x256xf32> to vector<1x256xf32>
    %cst_17 = arith.constant dense<0.000000e+00> : vector<1x32xf32>
    %25 = tpu.matmul %24, %23, %cst_17 {dimension_numbers = #tpu.dot_dimension_numbers<[1], [0], [0], [1], [0, 0, 1, 1], [], []>} : vector<1x256xf32>, vector<256x32xf32>, vector<1x32xf32> -> vector<1x32xf32>
    %cst_18 = arith.constant dense<0.000000e+00> : vector<32xf32>
    %26 = vector.multi_reduction <add>, %23, %cst_18 [0] : vector<256x32xf32> to vector<32xf32>
    %27 = vector.shape_cast %26 : vector<32xf32> to vector<1x32xf32>
    %28 = tpu.concatenate %19, %25 in 0 : vector<1x32xf32>, vector<1x32xf32> -> vector<2x32xf32>
    %29 = tpu.concatenate %21, %27 in 0 : vector<1x32xf32>, vector<1x32xf32> -> vector<2x32xf32>
    %c0_19 = arith.constant 0 : index
    %c0_20 = arith.constant 0 : index
    %30 = vector.load %arg4[%c0_19, %c0_20] : memref<2x32xf32, #tpu.memory_space<vmem>>, vector<2x32xf32>
    tpu.vector_store %arg4[%c0_19, %c0_20], %28 {strides = array<i32>} : memref<2x32xf32, #tpu.memory_space<vmem>>, vector<2x32xf32>,
    %31 = arith.subf %29, %28 : vector<2x32xf32>
    %c0_21 = arith.constant 0 : index
    %c0_22 = arith.constant 0 : index
    %32 = vector.load %arg5[%c0_21, %c0_22] : memref<2x32xf32, #tpu.memory_space<vmem>>, vector<2x32xf32>
    tpu.vector_store %arg5[%c0_21, %c0_22], %31 {strides = array<i32>} : memref<2x32xf32, #tpu.memory_space<vmem>>, vector<2x32xf32>,
    return
  }
  func.func @transform_0(%arg0: i32) -> (i32, i32, i32) {
    %c0_i32 = arith.constant 0 : i32
    %c0_i32_0 = arith.constant 0 : i32
    %c0_i32_1 = arith.constant 0 : i32
    return %arg0, %c0_i32, %c0_i32_0 : i32, i32, i32
  }
  func.func @transform_1(%arg0: i32) -> (i32, i32, i32) {
    %c0_i32 = arith.constant 0 : i32
    %c0_i32_0 = arith.constant 0 : i32
    %c0_i32_1 = arith.constant 0 : i32
    return %arg0, %c0_i32, %c0_i32_0 : i32, i32, i32
  }
  func.func @transform_2(%arg0: i32) -> (i32, i32, i32) {
    %c0_i32 = arith.constant 0 : i32
    %c0_i32_0 = arith.constant 0 : i32
    %c0_i32_1 = arith.constant 0 : i32
    return %arg0, %c0_i32, %c0_i32_0 : i32, i32, i32
  }
  func.func @transform_3(%arg0: i32) -> (i32, i32) {
    %c0_i32 = arith.constant 0 : i32
    %c0_i32_0 = arith.constant 0 : i32
    return %arg0, %c0_i32 : i32, i32
  }
  func.func @transform_4(%arg0: i32) -> (i32, i32) {
    %c0_i32 = arith.constant 0 : i32
    %c0_i32_0 = arith.constant 0 : i32
    return %arg0, %c0_i32 : i32, i32
  }
  func.func @transform_5(%arg0: i32) -> (i32, i32) {
    %c0_i32 = arith.constant 0 : i32
    %c0_i32_0 = arith.constant 0 : i32
    return %arg0, %c0_i32 : i32, i32
  }
}

</mosaic_0001>

<bundles_post_ra>
// kernel: tpu_custom_call.1
= control target key start
LH: loop header
LB: loop body
LE: loop exit
PB: predicated region body
PF: predicated region fallthrough
CT: control target
= control target key end

     0   :  { %11 = vsyncpa [#allocation3], 0  ;;  %v809_v1 = vmov 0   ;;  %s1372_s0 = inlined_call_operand.vmem [shape: f32[2,4,1], index: 0, kind: input, shape index: {}]   ;;  %s1373_s1 = inlined_call_operand.vmem [shape: f32[2,4,256], index: 1, kind: input, shape index: {}]   ;;  %s1374_s2 = inlined_call_operand.vmem [shape: f32[2,256,32], index: 2, kind: input, shape index: {}]   ;;  %s1375_s3 = inlined_call_operand.hbm [shape: f32[2,32], index: 3, kind: output, shape index: {0}]   ;;  %s1376_s4 = inlined_call_operand.hbm [shape: f32[2,32], index: 4, kind: output, shape index: {1}]   ;;  %s1377_s5 = inlined_call_operand.hbm [shape: f32[2,256], index: 5, kind: output, shape index: {2}]  }
   0x1   :  { %v19_v0 = vld [vmem:[%s1372_s0] sm:$0xf]  ;;  %734 = vset.pattern.permute.xlu0 %v809_v1 }
   0x2   :  { %25 = vperm.xlu0 %734, %v19_v0  }
   0x3   :  { %12 = vsyncpa [#allocation5], 0  ;;  %v20_v2 = vld [vmem:[%s1372_s0 + $0x4] sm:$0xf]  ;;  %v810_v3 = vmov 839922192   ;;  %v34_v5 = vlaneseq }
   0x4   :  { %v32_v4 = vunpack.c.l.s4 %v810_v3  ;;  %v21_v9 = vld [vmem:[%s1373_s1] sm:$0xff]  ;;  %vm55_vm0 = vcmask 1043456   ;;  %v22_v13 = vld [vmem:[%s1373_s1 + $0x8] sm:$0xff]  ;;  %vm88_vm1 = vcmask 1041409   ;;  %vm93_vm2 = vcmask 1041408   ;;  %v901_v57 = vld [vmem:[%s1374_s2 + $0x10] sm:$0xff] }
   0x5   :  { %v851_v7 = vshrl.u32 %v34_v5, 7  ;;  %v883_v52 = vld [vmem:[%s1374_s2 + $0x80] sm:$0xff]  ;;  %v888_v53 = vld [vmem:[%s1374_s2 + $0x88] sm:$0xff]  ;;  %vm269_vm3 = vcmask 261120   ;;  %v910_v62 = vld [vmem:[%s1374_s2 + $0x18] sm:$0xff]  ;;  %vm159_vm4 = vcmask 1043459  }
   0x6   :  { %29 = vperm.xlu0 %734, %v20_v2   ;;  %v33_v6 = vunpack.c.0.s8 %v32_v4  ;;  %v167_v54 = vld [vmem:[%s1374_s2] sm:$0xff]  ;;  %v664_v55 = vpack.c.bf16 %v888_v53, %v883_v52  ;;  %v168_v56 = vld [vmem:[%s1374_s2 + $0x8] sm:$0xff]  ;;  %v273_v61 = vsel %vm269_vm3, %v901_v57, 0.0  ;;  %v275_v0 = vsel %vm269_vm3, %v910_v62, 0.0  ;;  %s813_s20 = smov [#allocation4]   ;;  %s814_s22 = smov [#allocation6]  }
   0x7   :  { %v270_v58 = vsel %vm269_vm3, %v167_v54, 0.0  ;;  %v666_v59 = vpack.c.bf16 %v168_v56, %v167_v54  ;;  %v271_v60 = vsel %vm269_vm3, %v168_v56, 0.0  ;;  %v917_v1 = vld [vmem:[%s1374_s2 + $0x20] sm:$0xff]  ;;  %v929_v5 = vld [vmem:[%s1374_s2 + $0x188] sm:$0xff]  ;;  %vm161_vm5 = vcmask 1045509   ;;  %s537_s21 = sshll.u32 %s813_s20, 4  ;;  %s1320_s21 = int_to_ptr.vmem [resolvable:$true] %s537_s21 }
   0x8   :  { %v36_v8 = vsub.s32 %v33_v6, %v851_v7  ;;  %665 = vmatprep.subr.bf16.mxu0 %v664_v55  ;;  %v272_v63 = vadd.f32 %v271_v60, %v270_v58  ;;  %v277_v3 = vsel %vm269_vm3, %v917_v1, 0.0  ;;  %v924_v4 = vld [vmem:[%s1374_s2 + $0x180] sm:$0xff]  ;;  %v934_v6 = vld [vmem:[%s1374_s2 + $0x28] sm:$0xff]  ;;  %v568_v55 = vld [vmem:[%s1374_s2 + $0x130] sm:$0xff]  ;;  %vm163_vm6 = vcmask 1047559   ;;  %s547_s23 = sshll.u32 %s814_s22, 4  ;;  %s1323_s23 = int_to_ptr.vmem [resolvable:$true] %s547_s23 }
   0x9   :  { %667 = vmatpush3.bf16.msra.mxu0 %v666_v59  ;;  %v1045_v58 = vld [vmem:[%s1374_s2 + $0xb0] sm:$0xff]  ;;  %v1050_v59 = vld [vmem:[%s1374_s2 + $0xb8] sm:$0xff]  ;;  %vm514_vm7 = vcmask 1040384   ;;  %vm517_vm8 = vcmask 254976  }
   0xa   :  { %v274_v2 = vadd.f32 %v273_v61, %v272_v63  ;;  %v453_v61 = vsel %vm269_vm3, %v568_v55, 0.0 }
  0x81   :  { %v26_v10 = vpop.permute.xlu0 %25 }
  0x82   :  { %v37_v11 = vrot.slane %v26_v10, %v36_v8  ;;  %v562_v10 = vld [vmem:[%s1374_s2 + $0x100] sm:$0xff] }
  0x84   :  { %v47_v12 = vmul.f32 %v37_v11, %v21_v9  ;;  %v696_v9 = vpack.c.bf16 %v929_v5, %v924_v4  ;;  %v563_v11 = vld [vmem:[%s1374_s2 + $0x108] sm:$0xff] }
  0x85   :  { %v30_v14 = vpop.permute.xlu0 %29 }
  0x86   :  { %v51_v15 = vcombine.high %v47_v12, %v47_v12  ;;  %v56_v16 = vsel %vm55_vm0, %v47_v12, -inf  ;;  %v44_v17 = vrot.slane %v30_v14, %v36_v8  ;;  %v276_v8 = vadd.f32 %v275_v0, %v274_v2  ;;  %697 = vmatprep.subr.bf16.mxu1 %v696_v9  ;;  %v1062_v0 = vld [vmem:[%s1374_s2 + $0x1b0] sm:$0xff]  ;;  %v1067_v2 = vld [vmem:[%s1374_s2 + $0x1b8] sm:$0xff] }
  0x87   :  { %v57_v18 = vrot.slane %v56_v16, 4  ;;  %v279_v12 = vsel %vm269_vm3, %v934_v6, 0.0  ;;  %v698_v14 = vpack.c.bf16 %v563_v11, %v562_v10  ;;  %v569_v9 = vld [vmem:[%s1374_s2 + $0x138] sm:$0xff] }
  0x88   :  { %v63_v19 = vsel %vm55_vm0, %v51_v15, -inf  ;;  %v48_v20 = vmul.f32 %v44_v17, %v22_v13  ;;  %v564_v13 = vld [vmem:[%s1374_s2 + $0x110] sm:$0xff]  ;;  %v442_v15 = vsel %vm269_vm3, %v562_v10, 0.0 }
  0x89   :  { %v58_v21 = vmax.f32 %v56_v16, %v57_v18  ;;  %v64_v22 = vrot.slane %v63_v19, 4  ;;  %v443_v16 = vsel %vm269_vm3, %v563_v11, 0.0  ;;  %v954_v17 = vld [vmem:[%s1374_s2 + $0x30] sm:$0xff]  ;;  %v278_v18 = vadd.f32 %v277_v3, %v276_v8  ;;  %699 = vmatpush3.bf16.msra.mxu1 %v698_v14 }
  0x8a   :  { %v52_v23 = vcombine.high %v48_v20, %v48_v20  ;;  %v70_v24 = vsel %vm55_vm0, %v48_v20, -inf  ;;  %v444_v20 = vadd.f32 %v443_v16, %v442_v15  ;;  %v1072_v3 = vld [vmem:[%s1374_s2 + $0x50] sm:$0xff]  ;;  %v674_v11 = vpack.c.bf16 %v934_v6, %v917_v1  ;;  %v1088_v16 = vld [vmem:[%s1374_s2 + $0x58] sm:$0xff]  ;;  %v1093_v1 = vld [vmem:[%s1374_s2 + $0x140] sm:$0xff] }
  0x8b   :  { %v59_v25 = vrot.slane %v58_v21, 2  ;;  %v65_v26 = vmax.f32 %v63_v19, %v64_v22  ;;  %v71_v27 = vrot.slane %v70_v24, 4  ;;  %v565_v19 = vld [vmem:[%s1374_s2 + $0x118] sm:$0xff]  ;;  %v281_v22 = vsel %vm269_vm3, %v954_v17, 0.0 }
  0x8c   :  { %v77_v28 = vsel %vm55_vm0, %v52_v23, -inf  ;;  %v447_v23 = vsel %vm269_vm3, %v565_v19, 0.0  ;;  %v676_v15 = vpack.c.bf16 %v1050_v59, %v1045_v58 }
  0x8d   :  { %v60_v29 = vmax.f32 %v58_v21, %v59_v25  ;;  %v66_v30 = vrot.slane %v65_v26, 2  ;;  %v72_v31 = vmax.f32 %v70_v24, %v71_v27  ;;  %v78_v32 = vrot.slane %v77_v28, 4  ;;  %v966_v24 = vld [vmem:[%s1374_s2 + $0x38] sm:$0xff]  ;;  %v971_v25 = vld [vmem:[%s1374_s2 + $0x90] sm:$0xff]  ;;  %v976_v27 = vld [vmem:[%s1374_s2 + $0x120] sm:$0xff] }
  0x8e   :  { %v445_v21 = vsel %vm269_vm3, %v564_v13, 0.0 }
  0x8f   :  { %v73_v33 = vrot.slane %v72_v31, 2  ;;  %v79_v34 = vmax.f32 %v77_v28, %v78_v32  ;;  %v67_v35 = vmax.f32 %v65_v26, %v66_v30  ;;  %v61_v38 = vrot.slane %v60_v29, 1  ;;  %v991_v32 = vld [vmem:[%s1374_s2 + $0x190] sm:$0xff] }
  0x90   :  { %v280_v26 = vadd.f32 %v279_v12, %v278_v18  ;;  %v446_v28 = vadd.f32 %v445_v21, %v444_v20  ;;  %v283_v30 = vsel %vm269_vm3, %v966_v24, 0.0  ;;  %v289_v12 = vsel %vm269_vm3, %v1072_v3, 0.0 }
  0x91   :  { %v74_v36 = vmax.f32 %v72_v31, %v73_v33  ;;  %v80_v37 = vrot.slane %v79_v34, 2  ;;  %v68_v39 = vrot.slane %v67_v35, 1  ;;  %v864_v42 = vmax.f32 %v60_v29, %v61_v38  ;;  %v981_v29 = vld [vmem:[%s1374_s2 + $0x40] sm:$0xff]  ;;  %v567_v31 = vld [vmem:[%s1374_s2 + $0x128] sm:$0xff] }
  0x92   :  { %v449_v33 = vsel %vm269_vm3, %v976_v27, 0.0  ;;  %v670_v38 = vpack.c.bf16 %v910_v62, %v901_v57  ;;  %v706_v14 = vpack.c.bf16 %v567_v31, %v976_v27  ;;  %v291_v20 = vsel %vm269_vm3, %v1088_v16, 0.0 }
  0x93   :  { %v75_v40 = vrot.slane %v74_v36, 1  ;;  %v81_v41 = vmax.f32 %v79_v34, %v80_v37  ;;  %v868_v45 = vmax.f32 %v67_v35, %v68_v39  ;;  %v998_v34 = vld [vmem:[%s1374_s2 + $0x48] sm:$0xff]  ;;  %v282_v35 = vadd.f32 %v281_v22, %v280_v26  ;;  %v1003_v37 = vld [vmem:[%s1374_s2 + $0x98] sm:$0xff]  ;;  %v1104_v22 = vld [vmem:[%s1374_s2 + $0x60] sm:$0xff] }
  0x94   :  { %v1010_v39 = vld [vmem:[%s1374_s2 + $0x198] sm:$0xff]  ;;  %v287_v60 = vsel %vm269_vm3, %v998_v34, 0.0  ;;  %v457_v21 = vsel %vm269_vm3, %v1093_v1, 0.0  ;;  %v1109_v26 = vld [vmem:[%s1374_s2 + $0x148] sm:$0xff] }
  0x95   :  { %v866_v43 = vmax.f32 %v74_v36, %v75_v40  ;;  %v82_v44 = vrot.slane %v81_v41, 1  ;;  %v448_v36 = vadd.f32 %v447_v23, %v446_v28  ;;  %v1015_v40 = vld [vmem:[%s1374_s2 + $0xa0] sm:$0xff]  ;;  %v284_v54 = vadd.f32 %v283_v30, %v282_v35  ;;  %v1120_v35 = vld [vmem:[%s1374_s2 + $0x68] sm:$0xff] }
  0x96   :  { %v700_v57 = vpack.c.bf16 %v1010_v39, %v991_v32  ;;  %v678_v28 = vpack.c.bf16 %v966_v24, %v954_v17  ;;  %v293_v30 = vsel %vm269_vm3, %v1104_v22, 0.0  ;;  %v295_v24 = vsel %vm269_vm3, %v1120_v35, 0.0 }
  0x97   :  { %v870_v46 = vmax.f32 %v81_v41, %v82_v44  ;;  %v89_v47 = vsel %vm88_vm1, %v866_v43, %v864_v42  ;;  %v285_v41 = vsel %vm269_vm3, %v981_v29, 0.0  ;;  %v451_v44 = vsel %vm269_vm3, %v567_v31, 0.0 }
  0x98   :  { %v94_v49 = vsel %vm93_vm2, %v89_v47, inf  ;;  %v668_v47 = vpack.c.bf16 %v1003_v37, %v971_v25  ;;  %v450_v56 = vadd.f32 %v449_v33, %v448_v36  ;;  %v286_v8 = vadd.f32 %v285_v41, %v284_v54  ;;  %701 = vmatprep.subr.bf16.mxu1 %v700_v57  ;;  %v1148_v57 = vld [vmem:[%s1374_s2 + $0x78] sm:$0xff] }
  0x99   :  { %v90_v48 = vsel %vm88_vm1, %v870_v46, %v868_v45  ;;  %v459_v31 = vsel %vm269_vm3, %v1109_v26, 0.0  ;;  %v710_v33 = vpack.c.bf16 %v569_v9, %v568_v55 }
  0x9a   :  { %v95_v50 = vsel %vm93_vm2, %v90_v48, inf  ;;  %v702_v48 = vpack.c.bf16 %v565_v19, %v564_v13  ;;  %669 = vmatprep.subr.bf16.mxu0 %v668_v47  ;;  %v452_v10 = vadd.f32 %v451_v44, %v450_v56  ;;  %v455_v13 = vsel %vm269_vm3, %v569_v9, 0.0  ;;  %v1134_v44 = vld [vmem:[%s1374_s2 + $0x70] sm:$0xff] }
  0x9b   :  { %v96_v51 = vmin.f32 %v94_v49, %v95_v50  ;;  %v1025_v49 = vld [vmem:[%s1374_s2 + $0xa8] sm:$0xff]  ;;  %v1030_v50 = vld [vmem:[%s1374_s2 + $0x1a0] sm:$0xff]  ;;  %671 = vmatpush3.bf16.msra.mxu0 %v670_v38  ;;  %v288_v18 = vadd.f32 %v287_v60, %v286_v8  ;;  %v708_v19 = vpack.c.bf16 %v1067_v2, %v1062_v0  ;;  %v1125_v38 = vld [vmem:[%s1374_s2 + $0x150] sm:$0xff]  ;;  %v297_v55 = vsel %vm269_vm3, %v1134_v44, 0.0 }
  0x9c   :  { %v672_v62 = vpack.c.bf16 %v1025_v49, %v1015_v40  ;;  %703 = vmatpush3.bf16.msra.mxu1 %v702_v48  ;;  %v454_v6 = vadd.f32 %v453_v61, %v452_v10  ;;  %v461_v41 = vsel %vm269_vm3, %v1125_v38, 0.0  ;;  %v1139_v48 = vld [vmem:[%s1374_s2 + $0x158] sm:$0xff]  ;;  %v1153_v61 = vld [vmem:[%s1374_s2 + $0x160] sm:$0xff]  ;;  %v1162_v10 = vld [vmem:[%s1374_s2 + $0x168] sm:$0xff] }
  0x9d   :  { %97 = vmin.xlane.f32.xlu1 %v96_v51  ;;  %v1035_v51 = vld [vmem:[%s1374_s2 + $0x1a8] sm:$0xff]  ;;  %v290_v23 = vadd.f32 %v289_v12, %v288_v18  ;;  %v463_v56 = vsel %vm269_vm3, %v1139_v48, 0.0  ;;  %v465_v8 = vsel %vm269_vm3, %v1153_v61, 0.0  ;;  %v301_v12 = vsel %vm269_vm3, %v883_v52, 0.0  ;;  %v1180_v52 = vld [vmem:[%s1374_s2 + $0x178] sm:$0xff] }
  0x9e   :  { %v704_v63 = vpack.c.bf16 %v1035_v51, %v1030_v50  ;;  %673 = vmatprep.subr.bf16.mxu0 %v672_v62  ;;  %v456_v27 = vadd.f32 %v455_v13, %v454_v6  ;;  %v467_v13 = vsel %vm269_vm3, %v1162_v10, 0.0  ;;  %v303_v6 = vsel %vm269_vm3, %v888_v53, 0.0 }
  0x9f   :  { %675 = vmatpush3.bf16.msra.mxu0 %v674_v11  ;;  %v292_v36 = vadd.f32 %v291_v20, %v290_v23  ;;  %v305_v23 = vsel %vm269_vm3, %v971_v25, 0.0  ;;  %v473_v53 = vsel %vm269_vm3, %v924_v4, 0.0 }
  0xa0   :  { %705 = vmatprep.subr.bf16.mxu1 %v704_v63  ;;  %677 = vmatprep.subr.bf16.mxu0 %v676_v15  ;;  %v458_v17 = vadd.f32 %v457_v21, %v456_v27  ;;  %v299_v63 = vsel %vm269_vm3, %v1148_v57, 0.0  ;;  %v1171_v15 = vld [vmem:[%s1374_s2 + $0x170] sm:$0xff]  ;;  %v471_v27 = vsel %vm269_vm3, %v1180_v52, 0.0 }
  0xa1   :  { %707 = vmatpush3.bf16.msra.mxu1 %v706_v14  ;;  %v294_v47 = vadd.f32 %v293_v30, %v292_v36 }
  0xa2   :  { %709 = vmatprep.subr.bf16.mxu1 %v708_v19  ;;  %v460_v54 = vadd.f32 %v459_v31, %v458_v17  ;;  %v469_v19 = vsel %vm269_vm3, %v1171_v15, 0.0  ;;  %v307_v31 = vsel %vm269_vm3, %v1003_v37, 0.0  ;;  %v475_v17 = vsel %vm269_vm3, %v929_v5, 0.0 }
  0xa3   :  { %679 = vmatpush3.bf16.msra.mxu0 %v678_v28  ;;  %v296_v60 = vadd.f32 %v295_v24, %v294_v47  ;;  %v309_v24 = vsel %vm269_vm3, %v1015_v40, 0.0  ;;  %v477_v47 = vsel %vm269_vm3, %v991_v32, 0.0  ;;  %v479_v37 = vsel %vm269_vm3, %v1010_v39, 0.0 }
  0xa4   :  { %v462_v62 = vadd.f32 %v461_v41, %v460_v54  ;;  %v311_v54 = vsel %vm269_vm3, %v1025_v49, 0.0  ;;  %v481_v40 = vsel %vm269_vm3, %v1030_v50, 0.0  ;;  %v483_v49 = vsel %vm269_vm3, %v1035_v51, 0.0 }
  0xa5   :  { %711 = vmatpush3.bf16.msra.mxu1 %v710_v33  ;;  %v298_v9 = vadd.f32 %v297_v55, %v296_v60  ;;  %v485_v39 = vsel %vm269_vm3, %v1062_v0, 0.0 }
  0xa6   :  { %v464_v11 = vadd.f32 %v463_v56, %v462_v62  ;;  %v313_v56 = vsel %vm269_vm3, %v1045_v58, 0.0  ;;  %v315_v62 = vsel %vm269_vm3, %v1050_v59, 0.0  ;;  %v487_v58 = vsel %vm269_vm3, %v1067_v2, 0.0 }
  0xa7   :  { %v300_v14 = vadd.f32 %v299_v63, %v298_v9 }
  0xa8   :  { %v466_v18 = vadd.f32 %v465_v8, %v464_v11 }
  0xa9   :  { %v302_v20 = vadd.f32 %v301_v12, %v300_v14 }
  0xaa   :  { %v468_v21 = vadd.f32 %v467_v13, %v466_v18 }
  0xab   :  { %v304_v28 = vadd.f32 %v303_v6, %v302_v20 }
  0xac   :  { %v470_v30 = vadd.f32 %v469_v19, %v468_v21 }
  0xad   :  { %v306_v33 = vadd.f32 %v305_v23, %v304_v28  ;;  %v586_v28 = vld [vmem:[%s1374_s2 + $0x1c0] sm:$0xff] }
  0xae   :  { %v472_v36 = vadd.f32 %v471_v27, %v470_v30  ;;  %v682_v27 = vpack.c.bf16 %v998_v34, %v981_v29  ;;  %v587_v30 = vld [vmem:[%s1374_s2 + $0x1c8] sm:$0xff]  ;;  %v194_v29 = vld [vmem:[%s1374_s2 + $0xd8] sm:$0xff] }
  0xaf   :  { %v308_v41 = vadd.f32 %v307_v31, %v306_v33  ;;  %v714_v31 = vpack.c.bf16 %v1109_v26, %v1093_v1  ;;  %v193_v33 = vld [vmem:[%s1374_s2 + $0xd0] sm:$0xff]  ;;  %v589_v1 = vld [vmem:[%s1374_s2 + $0x1d8] sm:$0xff] }
  0xb0   :  { %v474_v25 = vadd.f32 %v473_v53, %v472_v36  ;;  %v712_v53 = vpack.c.bf16 %v587_v30, %v586_v28  ;;  %v684_v34 = vpack.c.bf16 %v194_v29, %v193_v33  ;;  %v686_v36 = vpack.c.bf16 %v1088_v16, %v1072_v3  ;;  %v195_v3 = vld [vmem:[%s1374_s2 + $0xe0] sm:$0xff]  ;;  %v196_v16 = vld [vmem:[%s1374_s2 + $0xe8] sm:$0xff] }
  0xb1   :  { %v310_v55 = vadd.f32 %v309_v24, %v308_v41  ;;  %v491_v41 = vsel %vm269_vm3, %v587_v30, 0.0 }
  0xb2   :  { %v476_v4 = vadd.f32 %v475_v17, %v474_v25  ;;  %713 = vmatprep.subr.bf16.mxu1 %v712_v53  ;;  %v588_v17 = vld [vmem:[%s1374_s2 + $0x1d0] sm:$0xff]  ;;  %v489_v25 = vsel %vm269_vm3, %v586_v28, 0.0 }
  0xb3   :  { %v312_v60 = vadd.f32 %v311_v54, %v310_v55  ;;  %715 = vmatpush3.bf16.msra.mxu1 %v714_v31  ;;  %v591_v55 = vld [vmem:[%s1374_s2 + $0x1e8] sm:$0xff] }
  0xb4   :  { %v478_v5 = vadd.f32 %v477_v47, %v476_v4  ;;  %v590_v4 = vld [vmem:[%s1374_s2 + $0x1e0] sm:$0xff] }
  0xb5   :  { %v314_v63 = vadd.f32 %v313_v56, %v312_v60  ;;  %v716_v56 = vpack.c.bf16 %v589_v1, %v588_v17  ;;  %v718_v60 = vpack.c.bf16 %v1139_v48, %v1125_v38  ;;  %v720_v38 = vpack.c.bf16 %v591_v55, %v590_v4  ;;  %v592_v48 = vld [vmem:[%s1374_s2 + $0x1f0] sm:$0xff] }
  0xb6   :  { %v480_v32 = vadd.f32 %v479_v37, %v478_v5  ;;  %v321_v37 = vsel %vm269_vm3, %v193_v33, 0.0  ;;  %v493_v5 = vsel %vm269_vm3, %v588_v17, 0.0 }
  0xb7   :  { %v316_v9 = vadd.f32 %v315_v62, %v314_v63  ;;  %v197_v63 = vld [vmem:[%s1374_s2 + $0xf0] sm:$0xff]  ;;  %717 = vmatprep.subr.bf16.mxu1 %v716_v56 }
  0xb8   :  { %v482_v8 = vadd.f32 %v481_v40, %v480_v32  ;;  %v688_v32 = vpack.c.bf16 %v196_v16, %v195_v3  ;;  %719 = vmatpush3.bf16.msra.mxu1 %v718_v60 }
  0xb9   :  { %721 = vmatprep.subr.bf16.mxu1 %v720_v38 }
  0xba   :  { %v484_v11 = vadd.f32 %v483_v49, %v482_v8  ;;  %v198_v49 = vld [vmem:[%s1374_s2 + $0xf8] sm:$0xff]  ;;  %v323_v8 = vsel %vm269_vm3, %v194_v29, 0.0 }
  0xbc   :  { %v486_v12 = vadd.f32 %v485_v39, %v484_v11  ;;  %v690_v39 = vpack.c.bf16 %v1120_v35, %v1104_v22  ;;  %v593_v11 = vld [vmem:[%s1374_s2 + $0x1f8] sm:$0xff]  ;;  %v497_v22 = vsel %vm269_vm3, %v590_v4, 0.0  ;;  %v692_v35 = vpack.c.bf16 %v198_v49, %v197_v63 }
  0xbe   :  { %v488_v13 = vadd.f32 %v487_v58, %v486_v12 }
  0xc0   :  { %v490_v54 = vadd.f32 %v489_v25, %v488_v13  ;;  %v722_v13 = vpack.c.bf16 %v1162_v10, %v1153_v61  ;;  %v726_v10 = vpack.c.bf16 %v1180_v52, %v1171_v15  ;;  %v811_v52 = vmov 1983009808  }
  0xc1   :  { %v139_v29 = vunpack.c.l.s4 %v811_v52 }
  0xc2   :  { %v492_v62 = vadd.f32 %v491_v41, %v490_v54  ;;  %723 = vmatpush3.bf16.msra.mxu1 %v722_v13 }
  0xc4   :  { %v494_v12 = vadd.f32 %v493_v5, %v492_v62 }
 0x12a   :  { %v98_v50 = vpop.xlane.xlu1 %97 }
 0x12b   :  { %v100_v14 = vrot.slane %v98_v50, 1  ;;  %v1219_v51 = vsub.f32 %v864_v42, %v98_v50  ;;  %v1222_v6 = vsub.f32 %v868_v45, %v98_v50  ;;  %v191_v42 = vld [vmem:[%s1374_s2 + $0xc0] sm:$0xff]  ;;  %v192_v45 = vld [vmem:[%s1374_s2 + $0xc8] sm:$0xff]  ;;  %v325_v50 = vsel %vm269_vm3, %v195_v3, 0.0  ;;  %s812_s2 = smov [#allocation2]  }
 0x12c   :  { %v680_v23 = vpack.c.bf16 %v192_v45, %v191_v42  ;;  %v317_v26 = vsel %vm269_vm3, %v191_v42, 0.0  ;;  %v319_v24 = vsel %vm269_vm3, %v192_v45, 0.0  ;;  %v331_v45 = vsel %vm269_vm3, %v198_v49, 0.0  ;;  %s527_s19 = sshll.u32 %s812_s2, 4  ;;  %s528_s19 = int_to_ptr.vmem [resolvable:$true] %s527_s19 }
 0x12d   :  { %v1213_v59 = vsub.f32 %v866_v43, %v100_v14  ;;  %v1216_v18 = vsub.f32 %v870_v46, %v100_v14  ;;  %v318_v47 = vadd.f32 %v317_v26, %v316_v9  ;;  %v495_v9 = vsel %vm269_vm3, %v589_v1, 0.0  ;;  %s739_s24 = scalar_lea.vmem %s528_s19, 32  ;;  %p744_p1 = scmp.lt.s32.totalorder %s528_s19, %s528_s19 }
 0x12e   :  { %681 = vmatprep.subr.bf16.mxu0 %v680_v23  ;;  %v694_v14 = vpack.c.bf16 %v1148_v57, %v1134_v44  ;;  %v501_v44 = vsel %vm269_vm3, %v592_v48, 0.0  ;;  %v503_v23 = vsel %vm269_vm3, %v593_v11, 0.0  ;;  %p740_p0 = scmp.ne.s32.totalorder %s528_s19, %s739_s24  ;;  %p745_p2 = scmp.lt.s32.totalorder %s739_s24, %s739_s24 }
 0x12f   :  { %v111_v0 = vrot.slane %v1213_v59, 7  ;;  %v113_v2 = vrot.slane %v1216_v18, 7  ;;  %683 = vmatpush3.bf16.msra.mxu0 %v682_v27  ;;  %v320_v40 = vadd.f32 %v319_v24, %v318_v47 }
 0x130   :  { %685 = vmatprep.subr.bf16.mxu0 %v684_v34  ;;  %p746_p3 = por %p745_p2, %p744_p1 }
 0x131   :  { %v112_v19 = vsel %vm88_vm1, %v111_v0, %v1219_v51  ;;  %v114_v43 = vsel %vm88_vm1, %v113_v2, %v1222_v6  ;;  %v322_v58 = vadd.f32 %v321_v37, %v320_v40  ;;  %v496_v2 = vadd.f32 %v495_v9, %v494_v12 }
 0x132   :  { %v117_v20 = vsel %vm93_vm2, %v112_v19, -inf  ;;  %v118_v46 = vsel %vm93_vm2, %v114_v43, -inf  ;;  %v724_v19 = vpack.c.bf16 %v593_v11, %v592_v48  ;;  %v327_v43 = vsel %vm269_vm3, %v196_v16, 0.0  ;;  %p747_p4 = pnand %p746_p3, %p740_p0 }
 0x133   :  { %v119_v21 = vmax.f32 %v117_v20, %v118_v46  ;;  %687 = vmatpush3.bf16.msra.mxu0 %v686_v36  ;;  %v324_v0 = vadd.f32 %v323_v8, %v322_v58  ;;  %v499_v20 = vsel %vm269_vm3, %v591_v55, 0.0  ;;  %v498_v61 = vadd.f32 %v497_v22, %v496_v2 }
 0x134   :  { %689 = vmatprep.subr.bf16.mxu0 %v688_v32  ;;  %725 = vmatprep.subr.bf16.mxu1 %v724_v19  ;;  %v140_v36 = vunpack.c.0.s8 %v139_v29 }
 0x135   :  { %120 = vmax.xlane.f32.xlu1 %v119_v21  ;;  %v326_v46 = vadd.f32 %v325_v50, %v324_v0  ;;  %v329_v21 = vsel %vm269_vm3, %v197_v63, 0.0  ;;  %v500_v42 = vadd.f32 %v499_v20, %v498_v61  ;;  %727 = vmatpush3.bf16.msra.mxu1 %v726_v10 }
 0x136   :  { %v143_v41 = vsub.s32 %v140_v36, %v851_v7 }
 0x137   :  { %691 = vmatpush3.bf16.msra.mxu0 %v690_v39  ;;  %v328_v57 = vadd.f32 %v327_v43, %v326_v46  ;;  %v502_v28 = vadd.f32 %v501_v44, %v500_v42 }
 0x138   :  { %693 = vmatprep.subr.bf16.mxu0 %v692_v35 }
 0x139   :  { %v330_v27 = vadd.f32 %v329_v21, %v328_v57  ;;  %v504_v53 = vadd.f32 %v503_v23, %v502_v28 }
 0x13b   :  { %695 = vmatpush3.bf16.msra.mxu0 %v694_v14  ;;  %v332_v30 = vadd.f32 %v331_v45, %v330_v27  ;;  %v505_v37 = vrot.slane %v504_v53, 4 }
 0x13d   :  { %v506_v7 = vadd.f32 %v505_v37, %v504_v53 }
 0x13f   :  { %v507_v60 = vrot.slane %v506_v7, 2 }
 0x141   :  { %v508_v62 = vadd.f32 %v507_v60, %v506_v7 }
 0x143   :  { %v509_v63 = vrot.slane %v508_v62, 1 }
 0x145   :  { %v510_v8 = vadd.f32 %v509_v63, %v508_v62 }
 0x1c2   :  { %v121_v31 = vpop.xlane.xlu1 %120 }
 0x1c3   :  { %v122_v33 = vmax.f32 %v121_v31, 1e-12 }
 0x1c5   :  { %v124_v15 = vrot.slane %v122_v33, 1  ;;  %735 = vrcp.f32 %v122_v33 }
 0x1c7   :  { %737 = vrcp.f32 %v124_v15 }
 0x1cf   :  { %v736_v34 = vpop.eup %735 }
 0x1d0   :  { %v128_v17 = vmul.f32 %v736_v34, %v1219_v51  ;;  %v129_v1 = vmul.f32 %v736_v34, %v1222_v6 }
 0x1d1   :  { %v738_v26 = vpop.eup %737 }
 0x1d2   :  { %263 = vmatprep.mubr.f32.mxu0 %v129_v1  ;;  %v131_v24 = vmul.f32 %v738_v26, %v1213_v59  ;;  %v132_v25 = vmul.f32 %v738_v26, %v1216_v18  ;;  %v137_v3 = vcombine.low %v128_v17, %v129_v1  ;;  %v333_v18 = vrot.slane %v332_v30, 4 }
 0x1d3   :  { %264 = vmatmul.mubr.f32.vlgmr.msra.gmra.mrb[0].mxu0 %v128_v17 }
 0x1d4   :  { %v145_v16 = vcombine.low %v131_v24, %v132_v25  ;;  %436 = vmatprep.mubr.f32.mxu1 %v132_v25  ;;  %v144_v54 = vrot.slane %v137_v3, %v143_v41  ;;  %v334_v56 = vadd.f32 %v333_v18, %v332_v30 }
 0x1d5   :  { %437 = vmatmul.mubr.f32.vlgmr.msra.gmra.mrb[0].mxu1 %v131_v24 }
 0x1d6   :  { %v152_v47 = vrot.slane %v145_v16, %v143_v41  ;;  %v335_v5 = vrot.slane %v334_v56, 2 }
 0x1d8   :  { %v157_v4 = vrot.slane %v152_v47, 7  ;;  %v336_v40 = vadd.f32 %v335_v5, %v334_v56 }
 0x1da   :  { %v158_v51 = vsel %vm88_vm1, %v157_v4, %v144_v54  ;;  %v337_v32 = vrot.slane %v336_v40, 1 }
 0x1db   :  { %v160_v6 = vsel %vm159_vm4, %v157_v4, %v158_v51 }
 0x1dc   :  { %v162_v55 = vsel %vm161_vm5, %v157_v4, %v160_v6  ;;  %v338_v49 = vadd.f32 %v337_v32, %v336_v40 }
 0x1dd   :  { %v164_v59 = vsel %vm163_vm6, %v157_v4, %v162_v55 }
 0x1de   :  { %166 = vst [vmem:[#allocation6] sm:$0xf] %v164_v59  ;;  %v516_v9 = vsel %vm514_vm7, %v338_v49, %v510_v8 }
 0x2a6   :  { %v626_v39 = vpop.f32.mrb[0].mxu0 }
 0x2a7   :  { %v627_v38 = vpop.f32.mrb[1].mxu0 }
 0x2a8   :  { %v628_v48 = vadd.f32 %v627_v38, %v626_v39  ;;  %v661_v11 = vpop.f32.mrb[0].mxu1 }
 0x2a9   :  { %v662_v58 = vpop.f32.mrb[1].mxu1 }
 0x2aa   :  { %v663_v12 = vadd.f32 %v662_v58, %v661_v11 }
 0x2ac   :  { %v512_v13 = vrot.slane %v663_v12, 7 }
 0x2ae   :  { %v515_v50 = vsel %vm514_vm7, %v628_v48, %v512_v13 }
 0x2af   :  { %v519_v22 = vsub.f32 %v516_v9, %v515_v50  ;;  %518 = vst.msk [vmem:[#allocation2] sm:$0x3] %vm517_vm8, %v515_v50 }
 0x2b0   :  { %750 = shalt.err (!%p747_p4)
}
 0x2b1   :  { %s751_s1 = scalar_lea.hbm %s1375_s3, 32 }
 0x2b2   :  { %p752_p5 = scmp.ne.s32.totalorder %s1375_s3, %s751_s1  ;;  %p755_p6 = scmp.lt.u32.totalorder %s751_s1, %s1375_s3 }
 0x2b4   :  { %p757_p7 = pnand %p755_p6, %p752_p5 }
 0x2b6   :  { %760 = shalt.err (!%p757_p7)
}
 0x2b7   :  { %530 = dma.vmem_to_hbm [thread:$0]  %s528_s19, 32, %s1375_s3, [#allocation3]   ;;  %520 = vst.msk [vmem:[#allocation4] sm:$0x3] %vm517_vm8, %v519_v22 }
 0x2b8   :  { %s761_s7 = scalar_lea.vmem %s1320_s21, 32  ;;  %p766_p9 = scmp.lt.s32.totalorder %s1320_s21, %s1320_s21 }
 0x2b9   :  { %p762_p8 = scmp.ne.s32.totalorder %s1320_s21, %s761_s7  ;;  %p767_p10 = scmp.lt.s32.totalorder %s761_s7, %s761_s7 }
 0x2bb   :  { %p768_p11 = por %p767_p10, %p766_p9 }
 0x2bd   :  { %p769_p12 = pnand %p768_p11, %p762_p8 }
 0x2bf   :  { %772 = shalt.err (!%p769_p12)
}
 0x2c0   :  { %s773_s10 = scalar_lea.hbm %s1376_s4, 32 }
 0x2c1   :  { %p774_p13 = scmp.ne.s32.totalorder %s1376_s4, %s773_s10  ;;  %p777_p0 = scmp.lt.u32.totalorder %s773_s10, %s1376_s4 }
 0x2c3   :  { %p779_p1 = pnand %p777_p0, %p774_p13 }
 0x2c5   :  { %782 = shalt.err (!%p779_p1)
}
 0x2c6   :  { %540 = dma.vmem_to_hbm [thread:$0]  %s1320_s21, 32, %s1376_s4, [#allocation5]  }
 0x2c7   :  { %s783_s16 = scalar_lea.vmem %s1323_s23, 64  ;;  %p788_p3 = scmp.lt.s32.totalorder %s1323_s23, %s1323_s23 }
 0x2c8   :  { %p784_p2 = scmp.ne.s32.totalorder %s1323_s23, %s783_s16  ;;  %p789_p4 = scmp.lt.s32.totalorder %s783_s16, %s783_s16 }
 0x2ca   :  { %p790_p5 = por %p789_p4, %p788_p3 }
 0x2cc   :  { %p791_p6 = pnand %p790_p5, %p784_p2 }
 0x2ce   :  { %794 = shalt.err (!%p791_p6)
}
 0x2cf   :  { %s795_s2 = scalar_lea.hbm %s1377_s5, 64 }
 0x2d0   :  { %p796_p7 = scmp.ne.s32.totalorder %s1377_s5, %s795_s2  ;;  %p799_p8 = scmp.lt.u32.totalorder %s795_s2, %s1377_s5 }
 0x2d2   :  { %p801_p9 = pnand %p799_p8, %p796_p7 }
 0x2d4   :  { %804 = shalt.err (!%p801_p9)
}
 0x2d5   :  { %550 = dma.vmem_to_hbm [thread:$0]  %s1323_s23, 64, %s1377_s5, [#allocation5]  }
 0x2d6   :  { %805 = dma.done.wait [#allocation3], 32  }
 0x2d7   :  { %806 = vsyncadd [#allocation3], 4294967264 }
 0x2d8   :  { %807 = dma.done.wait [#allocation5], 96  }
 0x2d9   :  { %808 = vsyncadd [#allocation5], 4294967200 }
 0x2da   :  { %560 = vsyncpa [#allocation3], 1 }
 0x2db   :  { %561 = vsyncpa [#allocation5], 1 }

</bundles_post_ra>
